<compile_context>
chip_gen: v6e
topology: v6e:2x2x1
jax: 0.10.0
libtpu: 0.0.40
codegen_flags: <defaults>
</compile_context>

<pallas_src>
import functools

import jax
import jax.numpy as jnp
from jax.experimental import pallas as pl
from jax.experimental.pallas import tpu as pltpu


def _round_up(x, m):
    return (x + m - 1) // m * m


def _tdl_kernel(x_ref, w_ref, b_ref, tgt_ref, ct_ref, cbn_ref, tnorm_ref,
                out_ref, m_scr, z_scr, num_scr, *, neg_two_over_e):
    k = pl.program_id(1)
    nk = pl.num_programs(1)

    @pl.when(k == 0)
    def _():
        m_scr[...] = jnp.full_like(m_scr, -jnp.inf)
        z_scr[...] = jnp.zeros_like(z_scr)
        num_scr[...] = jnp.zeros_like(num_scr)

    # logit projection for this (N-tile, K-tile): MXU, f32 accumulation;
    # bias is already f32 (padded columns carry -1e30 -> exp() == 0).
    logits = jnp.dot(x_ref[...], w_ref[...], preferred_element_type=jnp.float32)
    logits = logits + b_ref[...]

    # squared distance (MSE) to this codebook tile; row/codeword norms were
    # precomputed (and pre-scaled by 1/E) in the wrapper.
    dot = jnp.dot(tgt_ref[...], ct_ref[...], preferred_element_type=jnp.float32)
    mse = jnp.maximum(tnorm_ref[...] + cbn_ref[...] + neg_two_over_e * dot, 0.0)

    # online softmax: running max / normalizer / mse-weighted numerator
    m_prev = m_scr[...]
    m_new = jnp.maximum(m_prev, jnp.max(logits, axis=-1, keepdims=True))
    alpha = jnp.exp(m_prev - m_new)
    e = jnp.exp(logits - m_new)
    z_scr[...] = alpha * z_scr[...] + jnp.sum(e, axis=-1, keepdims=True)
    num_scr[...] = alpha * num_scr[...] + jnp.sum(mse * e, axis=-1, keepdims=True)
    m_scr[...] = m_new

    @pl.when(k == nk - 1)
    def _():
        # sum_k(mse * probs) == num / Z (exact divide keeps f32-ref parity)
        out_ref[...] = num_scr[...] / z_scr[...]


def token_discrepancy_loss(image_hidden_states, target_image_embeddings,
                           w_proj, b_proj, codebook, loss_weight,
                           _force_tiles=None):
    """image_hidden_states: [N, H], target_image_embeddings: [N, E],
    w_proj: [H, K] (PyTorch Linear weight transposed), b_proj: [K],
    codebook: [K, E]."""
    N, H = image_hidden_states.shape
    E = target_image_embeddings.shape[1]
    K = codebook.shape[0]
    if N == 0:
        return jnp.float32(0.0) * loss_weight

    in_isz = jnp.dtype(image_hidden_states.dtype).itemsize
    w_isz = jnp.dtype(w_proj.dtype).itemsize
    cb_isz = jnp.dtype(codebook.dtype).itemsize

    # sublane pack of the token axis: 8 for f32, 16 for bf16, 32 for int8/fp8
    pack = max(8, 32 // max(in_isz, 1))
    K_pad = _round_up(K, 128)

    # ---- generation-aware VMEM budget (128 MiB v5e/v6e, 64 MiB v7x) -------
    try:
        vmem_cap = int(getattr(pltpu.get_tpu_info(), "vmem_capacity_bytes",
                               64 * 2 ** 20))
    except Exception:  # interpret mode / abstract tracing
        vmem_cap = 64 * 2 ** 20
    usable = int(vmem_cap * 0.80)

    def vmem_need(tn, tk):
        # double-buffered streamed tiles + f32 [tn, tk] intermediates + scratch
        return (2 * tn * H * in_isz            # x tile
                + 2 * tn * E * in_isz          # tgt tile
                + 2 * tn * 4                   # tgt norms
                + 2 * H * tk * w_isz           # W tile
                + 2 * E * tk * cb_isz          # codebook^T tile
                + 2 * 2 * tk * 4               # bias + codebook norms
                + 4 * tn * tk * 4              # logits / exp / mse / dot
                + 5 * tn * 4)                  # m / Z / num scratch + out block

    # ---- TILE_K: full-K residency when weights+codebook fit ~half budget ---
    resident_bytes = 2 * (H + E) * K_pad * max(w_isz, cb_isz) + 4 * K_pad * 4
    tk_candidates = []
    if resident_bytes <= usable // 2:
        tk_candidates.append(K_pad)            # W / ct^T fetched once, resident
    for t in (512, 256, 128):
        if K_pad % t == 0 and t < K_pad and t not in tk_candidates:
            tk_candidates.append(t)
    if not tk_candidates:
        tk_candidates.append(K_pad)

    # ---- TILE_N: as large as the budget allows (cuts weight re-streaming) --
    max_tile_n = _round_up(min(N, 1024), pack)
    tn_candidates = []
    for c in (1024, 512, 256, 128, 64, 32, 16, 8):
        c = min(max_tile_n, _round_up(c, pack))
        if c not in tn_candidates:
            tn_candidates.append(c)

    TILE_N = TILE_K = None
    for tk in tk_candidates:
        for tn in tn_candidates:
            if vmem_need(tn, tk) <= usable:
                TILE_N, TILE_K = tn, tk
                break
        if TILE_N is not None:
            break
    if TILE_N is None:                         # pathological shapes
        TILE_N, TILE_K = pack, tk_candidates[-1]
    if _force_tiles is not None:               # test hook for multi-tile paths
        TILE_N, TILE_K = _force_tiles

    N_pad = _round_up(N, TILE_N)
    n_tiles = N_pad // TILE_N
    k_tiles = K_pad // TILE_K

    # ---- wrapper-side layout glue: pads, transpose, precomputed norms ------
    x = image_hidden_states
    tgt = target_image_embeddings
    if N_pad != N:
        x = jnp.pad(x, ((0, N_pad - N), (0, 0)))
        tgt = jnp.pad(tgt, ((0, N_pad - N), (0, 0)))
    w = w_proj                                 # [H, K]
    b = b_proj.astype(jnp.float32).reshape(1, K)
    ct = codebook.T                            # [E, K]
    if K_pad != K:
        w = jnp.pad(w, ((0, 0), (0, K_pad - K)))
        # padded logit columns get a huge negative bias -> zero softmax mass
        b = jnp.pad(b, ((0, 0), (0, K_pad - K)), constant_values=-1e30)
        ct = jnp.pad(ct, ((0, 0), (0, K_pad - K)))
    inv_e = 1.0 / float(E)
    # per-row / per-codeword squared norms, pre-scaled by 1/E and computed
    # ONCE in the wrapper (hoisted out of the kernel's K loop entirely)
    tnorm = jnp.sum(tgt.astype(jnp.float32) ** 2, axis=1, keepdims=True) * inv_e
    cbn = jnp.sum(ct.astype(jnp.float32) ** 2, axis=0, keepdims=True) * inv_e

    vmem_limit = int(min(int(vmem_cap * 0.85),
                         max(vmem_need(TILE_N, TILE_K) + (4 << 20), 16 << 20)))

    kernel = functools.partial(_tdl_kernel, neg_two_over_e=-2.0 * inv_e)

    per_token = pl.pallas_call(
        kernel,
        out_shape=jax.ShapeDtypeStruct((N_pad, 1), jnp.float32),
        grid=(n_tiles, k_tiles),
        in_specs=[
            pl.BlockSpec((TILE_N, H), lambda i, k: (i, 0)),   # x: streamed over N
            pl.BlockSpec((H, TILE_K), lambda i, k: (0, k)),   # W: streamed/resident over K
            pl.BlockSpec((1, TILE_K), lambda i, k: (0, k)),   # bias (f32, -1e30 pad)
            pl.BlockSpec((TILE_N, E), lambda i, k: (i, 0)),   # targets: streamed over N
            pl.BlockSpec((E, TILE_K), lambda i, k: (0, k)),   # codebook^T
            pl.BlockSpec((1, TILE_K), lambda i, k: (0, k)),   # codebook norms / E
            pl.BlockSpec((TILE_N, 1), lambda i, k: (i, 0)),   # target norms / E
        ],
        out_specs=pl.BlockSpec((TILE_N, 1), lambda i, k: (i, 0)),
        scratch_shapes=[
            pltpu.VMEM((TILE_N, 1), jnp.float32),   # running max m
            pltpu.VMEM((TILE_N, 1), jnp.float32),   # running normalizer Z
            pltpu.VMEM((TILE_N, 1), jnp.float32),   # running sum(mse * e)
        ],
        compiler_params=pltpu.CompilerParams(
            # per-N-tile outputs are disjoint -> N axis "parallel" (second TC
            # on v7x); K carries online-softmax state -> "arbitrary".
            dimension_semantics=("parallel", "arbitrary"),
            vmem_limit_bytes=vmem_limit),
    )(x, w, b, tgt, ct, cbn, tnorm)

    # ragged / padded rows are simply sliced away; mean over the real tokens
    return jnp.mean(per_token[:N, 0]) * loss_weight


def _reference(image_hidden_states, target_image_embeddings,
               w_proj, b_proj, codebook, loss_weight):
    logits = image_hidden_states.astype(jnp.float32) @ w_proj.astype(jnp.float32) \
        + b_proj.astype(jnp.float32)
    probs = jax.nn.softmax(logits, axis=-1)
    t = target_image_embeddings.astype(jnp.float32)
    c = codebook.astype(jnp.float32)
    d = (jnp.sum(t * t, axis=1, keepdims=True) + jnp.sum(c * c, axis=1)
         - 2.0 * t @ c.T) / c.shape[1]
    d = jnp.clip(d, 0.0, None)
    return jnp.mean(jnp.sum(d * probs, axis=1)) * loss_weight


if __name__ == "__main__":
    key = jax.random.PRNGKey(0)

    def run_case(N, H, K, E, loss_weight, key, force_tiles=None):
        k1, k2, k3, k4, k5 = jax.random.split(key, 5)
        x = jax.random.normal(k1, (N, H), dtype=jnp.float32)
        t = jax.random.normal(k2, (N, E), dtype=jnp.float32) * 0.02
        # Deterministic synthetic params (no checkpoint loading)
        w = jax.random.normal(k3, (H, K), dtype=jnp.float32) * 0.02   # Linear weight^T
        b = jax.random.normal(k4, (K,), dtype=jnp.float32) * 0.01     # Linear bias
        cb = jax.random.normal(k5, (K, E), dtype=jnp.float32) * 0.02  # codebook buffer
        loss = token_discrepancy_loss(x, t, w, b, cb, loss_weight,
                                      _force_tiles=force_tiles)
        loss = jax.block_until_ready(loss)
        ref = _reference(x, t, w, b, cb, loss_weight)
        assert jnp.allclose(loss, ref, rtol=1e-5, atol=1e-6), (N, H, K, E, loss, ref)

    # Small, module-consistent shapes (num_image_tokens, hidden, codebook_size, emb_dim)
    run_case(N=8, H=32, K=256, E=64, loss_weight=0.5, key=jax.random.fold_in(key, 0))
    # Ragged shapes: exercises row padding (N not multiple of tile) and
    # codebook-column padding (K not multiple of 128).
    run_case(N=5, H=24, K=200, E=40, loss_weight=0.5, key=jax.random.fold_in(key, 1))
    # Forced small tiles: exercises the streaming-K online-softmax path and
    # multiple N-tiles (n_tiles=3, k_tiles=3) at small shapes.
    run_case(N=20, H=32, K=384, E=64, loss_weight=0.5,
             key=jax.random.fold_in(key, 2), force_tiles=(8, 128))

    print("KERNEL_OK")
</pallas_src>

<mosaic_0001>
module attributes {stable_mosaic.version = 11 : i64} {
  func.func @_tdl_kernel(%arg0: i32, %arg1: i32, %arg2: memref<8x32xf32, #tpu.memory_space<vmem>>, %arg3: memref<32x256xf32, #tpu.memory_space<vmem>>, %arg4: memref<1x256xf32, #tpu.memory_space<vmem>>, %arg5: memref<8x64xf32, #tpu.memory_space<vmem>>, %arg6: memref<64x256xf32, #tpu.memory_space<vmem>>, %arg7: memref<1x256xf32, #tpu.memory_space<vmem>>, %arg8: memref<8x1xf32, #tpu.memory_space<vmem>>, %arg9: memref<8x1xf32, #tpu.memory_space<vmem>>, %arg10: memref<8x1xf32, #tpu.memory_space<vmem>>, %arg11: memref<8x1xf32, #tpu.memory_space<vmem>>, %arg12: memref<8x1xf32, #tpu.memory_space<vmem>>) attributes {dimension_semantics = [#tpu.dimension_semantics<parallel>, #tpu.dimension_semantics<arbitrary>], iteration_bounds = array<i64: 1, 1>, scalar_prefetch = 0 : i64, scratch_operands = 3 : i64, tpu.core_type = #tpu.core_type<tc>, window_params = [{transform_indices = @transform_0, window_bounds = array<i64: 8, 32>}, {transform_indices = @transform_1, window_bounds = array<i64: 32, 256>}, {transform_indices = @transform_2, window_bounds = array<i64: 1, 256>}, {transform_indices = @transform_3, window_bounds = array<i64: 8, 64>}, {transform_indices = @transform_4, window_bounds = array<i64: 64, 256>}, {transform_indices = @transform_5, window_bounds = array<i64: 1, 256>}, {transform_indices = @transform_6, window_bounds = array<i64: 8, 1>}, {transform_indices = @transform_7, window_bounds = array<i64: 8, 1>}]} {
    %c0_i32 = arith.constant 0 : i32
    %0 = arith.cmpi eq, %arg1, %c0_i32 : i32
    %1 = arith.extui %0 : i1 to i32
    %c0_i32_0 = arith.constant 0 : i32
    %2 = arith.cmpi ne, %1, %c0_i32_0 : i32
    scf.if %2 {
      %cst_34 = arith.constant 0xFF800000 : f32
      %48 = vector.broadcast %cst_34 : f32 to vector<8x1xf32>
      %c0_35 = arith.constant 0 : index
      %c0_36 = arith.constant 0 : index
      %49 = vector.load %arg10[%c0_35, %c0_36] : memref<8x1xf32, #tpu.memory_space<vmem>>, vector<8x1xf32>
      tpu.vector_store %arg10[%c0_35, %c0_36], %48 {strides = array<i32>} : memref<8x1xf32, #tpu.memory_space<vmem>>, vector<8x1xf32>,
      %cst_37 = arith.constant 0.000000e+00 : f32
      %50 = vector.broadcast %cst_37 : f32 to vector<8x1xf32>
      %c0_38 = arith.constant 0 : index
      %c0_39 = arith.constant 0 : index
      %51 = vector.load %arg11[%c0_38, %c0_39] : memref<8x1xf32, #tpu.memory_space<vmem>>, vector<8x1xf32>
      tpu.vector_store %arg11[%c0_38, %c0_39], %50 {strides = array<i32>} : memref<8x1xf32, #tpu.memory_space<vmem>>, vector<8x1xf32>,
      %cst_40 = arith.constant 0.000000e+00 : f32
      %52 = vector.broadcast %cst_40 : f32 to vector<8x1xf32>
      %c0_41 = arith.constant 0 : index
      %c0_42 = arith.constant 0 : index
      %53 = vector.load %arg12[%c0_41, %c0_42] : memref<8x1xf32, #tpu.memory_space<vmem>>, vector<8x1xf32>
      tpu.vector_store %arg12[%c0_41, %c0_42], %52 {strides = array<i32>} : memref<8x1xf32, #tpu.memory_space<vmem>>, vector<8x1xf32>,
    } else {
    }
    %c0 = arith.constant 0 : index
    %c0_1 = arith.constant 0 : index
    %3 = vector.load %arg2[%c0, %c0_1] : memref<8x32xf32, #tpu.memory_space<vmem>>, vector<8x32xf32>
    %c0_2 = arith.constant 0 : index
    %c0_3 = arith.constant 0 : index
    %4 = vector.load %arg3[%c0_2, %c0_3] : memref<32x256xf32, #tpu.memory_space<vmem>>, vector<32x256xf32>
    %cst = arith.constant dense<0.000000e+00> : vector<8x256xf32>
    %5 = tpu.matmul %3, %4, %cst {dimension_numbers = #tpu.dot_dimension_numbers<[1], [0], [0], [1], [0, 0, 1, 1], [], []>} : vector<8x32xf32>, vector<32x256xf32>, vector<8x256xf32> -> vector<8x256xf32>
    %c0_4 = arith.constant 0 : index
    %c0_5 = arith.constant 0 : index
    %6 = vector.load %arg4[%c0_4, %c0_5] : memref<1x256xf32, #tpu.memory_space<vmem>>, vector<1x256xf32>
    %7 = vector.broadcast %6 : vector<1x256xf32> to vector<8x256xf32>
    %8 = arith.addf %5, %7 : vector<8x256xf32>
    %c0_6 = arith.constant 0 : index
    %c0_7 = arith.constant 0 : index
    %9 = vector.load %arg5[%c0_6, %c0_7] : memref<8x64xf32, #tpu.memory_space<vmem>>, vector<8x64xf32>
    %c0_8 = arith.constant 0 : index
    %c0_9 = arith.constant 0 : index
    %10 = vector.load %arg6[%c0_8, %c0_9] : memref<64x256xf32, #tpu.memory_space<vmem>>, vector<64x256xf32>
    %cst_10 = arith.constant dense<0.000000e+00> : vector<8x256xf32>
    %11 = tpu.matmul %9, %10, %cst_10 {dimension_numbers = #tpu.dot_dimension_numbers<[1], [0], [0], [1], [0, 0, 1, 1], [], []>} : vector<8x64xf32>, vector<64x256xf32>, vector<8x256xf32> -> vector<8x256xf32>
    %c0_11 = arith.constant 0 : index
    %c0_12 = arith.constant 0 : index
    %12 = vector.load %arg8[%c0_11, %c0_12] : memref<8x1xf32, #tpu.memory_space<vmem>>, vector<8x1xf32>
    %c0_13 = arith.constant 0 : index
    %c0_14 = arith.constant 0 : index
    %13 = vector.load %arg7[%c0_13, %c0_14] : memref<1x256xf32, #tpu.memory_space<vmem>>, vector<1x256xf32>
    %14 = vector.broadcast %12 : vector<8x1xf32> to vector<8x256xf32>
    %15 = vector.broadcast %13 : vector<1x256xf32> to vector<8x256xf32>
    %16 = arith.addf %14, %15 : vector<8x256xf32>
    %cst_15 = arith.constant -3.125000e-02 : f32
    %17 = vector.broadcast %cst_15 : f32 to vector<8x256xf32>
    %18 = arith.mulf %17, %11 : vector<8x256xf32>
    %19 = arith.addf %16, %18 : vector<8x256xf32>
    %cst_16 = arith.constant 0.000000e+00 : f32
    %20 = vector.broadcast %cst_16 : f32 to vector<8x256xf32>
    %21 = arith.maximumf %19, %20 : vector<8x256xf32>
    %c0_17 = arith.constant 0 : index
    %c0_18 = arith.constant 0 : index
    %22 = vector.load %arg10[%c0_17, %c0_18] : memref<8x1xf32, #tpu.memory_space<vmem>>, vector<8x1xf32>
    %cst_19 = arith.constant dense<0xFF800000> : vector<8xf32>
    %23 = vector.multi_reduction <maximumf>, %8, %cst_19 [1] : vector<8x256xf32> to vector<8xf32>
    %24 = vector.shape_cast %23 : vector<8xf32> to vector<8x1xf32>
    %25 = arith.maximumf %22, %24 : vector<8x1xf32>
    %26 = arith.subf %22, %25 : vector<8x1xf32>
    %27 = math.exp %26 : vector<8x1xf32>
    %28 = vector.broadcast %25 : vector<8x1xf32> to vector<8x256xf32>
    %29 = arith.subf %8, %28 : vector<8x256xf32>
    %30 = math.exp %29 : vector<8x256xf32>
    %c0_20 = arith.constant 0 : index
    %c0_21 = arith.constant 0 : index
    %31 = vector.load %arg11[%c0_20, %c0_21] : memref<8x1xf32, #tpu.memory_space<vmem>>, vector<8x1xf32>
    %32 = arith.mulf %27, %31 : vector<8x1xf32>
    %cst_22 = arith.constant dense<0.000000e+00> : vector<8xf32>
    %33 = vector.multi_reduction <add>, %30, %cst_22 [1] : vector<8x256xf32> to vector<8xf32>
    %34 = vector.shape_cast %33 : vector<8xf32> to vector<8x1xf32>
    %35 = arith.addf %32, %34 : vector<8x1xf32>
    %c0_23 = arith.constant 0 : index
    %c0_24 = arith.constant 0 : index
    %36 = vector.load %arg11[%c0_23, %c0_24] : memref<8x1xf32, #tpu.memory_space<vmem>>, vector<8x1xf32>
    tpu.vector_store %arg11[%c0_23, %c0_24], %35 {strides = array<i32>} : memref<8x1xf32, #tpu.memory_space<vmem>>, vector<8x1xf32>,
    %c0_25 = arith.constant 0 : index
    %c0_26 = arith.constant 0 : index
    %37 = vector.load %arg12[%c0_25, %c0_26] : memref<8x1xf32, #tpu.memory_space<vmem>>, vector<8x1xf32>
    %38 = arith.mulf %27, %37 : vector<8x1xf32>
    %39 = arith.mulf %21, %30 : vector<8x256xf32>
    %cst_27 = arith.constant dense<0.000000e+00> : vector<8xf32>
    %40 = vector.multi_reduction <add>, %39, %cst_27 [1] : vector<8x256xf32> to vector<8xf32>
    %41 = vector.shape_cast %40 : vector<8xf32> to vector<8x1xf32>
    %42 = arith.addf %38, %41 : vector<8x1xf32>
    %c0_28 = arith.constant 0 : index
    %c0_29 = arith.constant 0 : index
    %43 = vector.load %arg12[%c0_28, %c0_29] : memref<8x1xf32, #tpu.memory_space<vmem>>, vector<8x1xf32>
    tpu.vector_store %arg12[%c0_28, %c0_29], %42 {strides = array<i32>} : memref<8x1xf32, #tpu.memory_space<vmem>>, vector<8x1xf32>,
    %c0_30 = arith.constant 0 : index
    %c0_31 = arith.constant 0 : index
    %44 = vector.load %arg10[%c0_30, %c0_31] : memref<8x1xf32, #tpu.memory_space<vmem>>, vector<8x1xf32>
    tpu.vector_store %arg10[%c0_30, %c0_31], %25 {strides = array<i32>} : memref<8x1xf32, #tpu.memory_space<vmem>>, vector<8x1xf32>,
    %c0_i32_32 = arith.constant 0 : i32
    %45 = arith.cmpi eq, %arg1, %c0_i32_32 : i32
    %46 = arith.extui %45 : i1 to i32
    %c0_i32_33 = arith.constant 0 : i32
    %47 = arith.cmpi ne, %46, %c0_i32_33 : i32
    scf.if %47 {
      %c0_34 = arith.constant 0 : index
      %c0_35 = arith.constant 0 : index
      %48 = vector.load %arg12[%c0_34, %c0_35] : memref<8x1xf32, #tpu.memory_space<vmem>>, vector<8x1xf32>
      %c0_36 = arith.constant 0 : index
      %c0_37 = arith.constant 0 : index
      %49 = vector.load %arg11[%c0_36, %c0_37] : memref<8x1xf32, #tpu.memory_space<vmem>>, vector<8x1xf32>
      %50 = arith.divf %48, %49 : vector<8x1xf32>
      %c0_38 = arith.constant 0 : index
      %c0_39 = arith.constant 0 : index
      %51 = vector.load %arg9[%c0_38, %c0_39] : memref<8x1xf32, #tpu.memory_space<vmem>>, vector<8x1xf32>
      tpu.vector_store %arg9[%c0_38, %c0_39], %50 {strides = array<i32>} : memref<8x1xf32, #tpu.memory_space<vmem>>, vector<8x1xf32>,
    } else {
    }
    return
  }
  func.func @transform_0(%arg0: i32, %arg1: i32) -> (i32, i32) {
    %c0_i32 = arith.constant 0 : i32
    %c0_i32_0 = arith.constant 0 : i32
    return %arg0, %c0_i32 : i32, i32
  }
  func.func @transform_1(%arg0: i32, %arg1: i32) -> (i32, i32) {
    %c0_i32 = arith.constant 0 : i32
    %c0_i32_0 = arith.constant 0 : i32
    return %c0_i32, %arg1 : i32, i32
  }
  func.func @transform_2(%arg0: i32, %arg1: i32) -> (i32, i32) {
    %c0_i32 = arith.constant 0 : i32
    %c0_i32_0 = arith.constant 0 : i32
    return %c0_i32, %arg1 : i32, i32
  }
  func.func @transform_3(%arg0: i32, %arg1: i32) -> (i32, i32) {
    %c0_i32 = arith.constant 0 : i32
    %c0_i32_0 = arith.constant 0 : i32
    return %arg0, %c0_i32 : i32, i32
  }
  func.func @transform_4(%arg0: i32, %arg1: i32) -> (i32, i32) {
    %c0_i32 = arith.constant 0 : i32
    %c0_i32_0 = arith.constant 0 : i32
    return %c0_i32, %arg1 : i32, i32
  }
  func.func @transform_5(%arg0: i32, %arg1: i32) -> (i32, i32) {
    %c0_i32 = arith.constant 0 : i32
    %c0_i32_0 = arith.constant 0 : i32
    return %c0_i32, %arg1 : i32, i32
  }
  func.func @transform_6(%arg0: i32, %arg1: i32) -> (i32, i32) {
    %c0_i32 = arith.constant 0 : i32
    %c0_i32_0 = arith.constant 0 : i32
    return %arg0, %c0_i32 : i32, i32
  }
  func.func @transform_7(%arg0: i32, %arg1: i32) -> (i32, i32) {
    %c0_i32 = arith.constant 0 : i32
    %c0_i32_0 = arith.constant 0 : i32
    return %arg0, %c0_i32 : i32, i32
  }
}

</mosaic_0001>

<bundles_post_ra>
// kernel: tpu_custom_call.1
= control target key start
LH: loop header
LB: loop body
LE: loop exit
PB: predicated region body
PF: predicated region fallthrough
CT: control target
= control target key end

     0   :  { %12 = vsyncpa [#allocation6], 0  ;;  %s501_s0 = inlined_call_operand.vmem [shape: f32[8,32], index: 0, kind: input, shape index: {}]   ;;  %s502_s1 = inlined_call_operand.hbm [shape: f32[32,256], index: 1, kind: input, shape index: {}]   ;;  %s503_s2 = inlined_call_operand.vmem [shape: f32[1,256], index: 2, kind: input, shape index: {}]   ;;  %s504_s3 = inlined_call_operand.hbm [shape: f32[8,64], index: 3, kind: input, shape index: {}]   ;;  %s505_s4 = inlined_call_operand.hbm [shape: f32[64,256], index: 4, kind: input, shape index: {}]   ;;  %s506_s5 = inlined_call_operand.vmem [shape: f32[1,256], index: 5, kind: input, shape index: {}]   ;;  %s507_s6 = inlined_call_operand.vmem [shape: f32[8,1], index: 6, kind: input, shape index: {}]   ;;  %s508_s7 = inlined_call_operand.vmem [shape: f32[8,1], index: 7, kind: output, shape index: {}]  }
   0x1   :  { %13 = vsyncpa [#allocation8], 0  ;;  %s422_s24 = smov [#allocation7]   ;;  %s423_s26 = smov [#allocation5]  }
   0x2   :  { %s36_s25 = sshll.u32 %s422_s24, 4  ;;  %s21_s27 = sshll.u32 %s423_s26, 4  ;;  %s37_s25 = int_to_ptr.vmem [resolvable:$true] %s36_s25  ;;  %s22_s27 = int_to_ptr.vmem [resolvable:$true] %s21_s27 }
   0x3   :  { %s366_s28 = scalar_lea.vmem %s37_s25, 128  ;;  %p371_p1 = scmp.lt.s32.totalorder %s37_s25, %s37_s25 }
   0x4   :  { %p367_p0 = scmp.ne.s32.totalorder %s37_s25, %s366_s28  ;;  %p372_p2 = scmp.lt.s32.totalorder %s366_s28, %s366_s28 }
   0x6   :  { %p373_p3 = por %p372_p2, %p371_p1 }
   0x8   :  { %p374_p4 = pnand %p373_p3, %p367_p0 }
   0xa   :  { %377 = shalt.err (!%p374_p4)
}
   0xb   :  { %39 = dma.hbm_to_vmem [thread:$0]  %s504_s3, 128, %s37_s25, [#allocation8]  }
   0xc   :  { %s386_s8 = scalar_lea.vmem %s22_s27, 1024  ;;  %p391_p6 = scmp.lt.s32.totalorder %s22_s27, %s22_s27 }
   0xd   :  { %p387_p5 = scmp.ne.s32.totalorder %s22_s27, %s386_s8  ;;  %p392_p7 = scmp.lt.s32.totalorder %s386_s8, %s386_s8 }
   0xf   :  { %p393_p8 = por %p392_p7, %p391_p6 }
  0x11   :  { %p394_p9 = pnand %p393_p8, %p387_p5 }
  0x13   :  { %397 = shalt.err (!%p394_p9)
}
  0x14   :  { %s424_s9 = smov 256   ;;  %s425_s10 = smov 16  }
  0x15   :  { %27 = dma.hbm_to_vmem [thread:$0]  %s502_s1, 1024, %s22_s27, [#allocation6], %s424_s9, %s424_s9, %s425_s10  }
  0x16   :  { %s426_s13 = smov [#allocation9]  }
  0x17   :  { %s45_s14 = sshll.u32 %s426_s13, 4  ;;  %s46_s14 = int_to_ptr.vmem [resolvable:$true] %s45_s14 }
  0x18   :  { %s406_s15 = scalar_lea.vmem %s46_s14, 2048  ;;  %p411_p11 = scmp.lt.s32.totalorder %s46_s14, %s46_s14 }
  0x19   :  { %p407_p10 = scmp.ne.s32.totalorder %s46_s14, %s406_s15  ;;  %p412_p12 = scmp.lt.s32.totalorder %s406_s15, %s406_s15 }
  0x1b   :  { %p413_p13 = por %p412_p12, %p411_p11 }
  0x1d   :  { %p414_p0 = pnand %p413_p13, %p407_p10 }
  0x1f   :  { %417 = shalt.err (!%p414_p0)
}
  0x20   :  { %51 = dma.hbm_to_vmem [thread:$0]  %s505_s4, 2048, %s46_s14, [#allocation8], %s424_s9, %s424_s9, %s425_s10  }
  0x21   :  { %418 = dma.done.wait [#allocation6], 1024  }
  0x22   :  { %419 = vsyncadd [#allocation6], 4294966272 }
  0x23   :  { %420 = dma.done.wait [#allocation8], 2176  }
  0x24   :  { %421 = vsyncadd [#allocation8], 4294965120  ;;  %vm69_vm0 = vcmask 7168   ;;  %v427_v0 = vmov 0.0   ;;  %v81_v1 = vld [vmem:[#allocation5 + $0x38] sm:$0xff]  ;;  %v80_v2 = vld [vmem:[#allocation5 + $0x30] sm:$0xff]  ;;  %v84_v28 = vlaneseq }
  0x25   :  { %71 = vst.msk [vmem:[#allocation3] sm:$0xff] %vm69_vm0, %v427_v0  ;;  %72 = vst.msk [vmem:[#allocation4] sm:$0xff] %vm69_vm0, %v427_v0  ;;  %162 = vmatprep.mubr.f32.mxu0 %v427_v0  ;;  %254 = vmatprep.mubr.f32.mxu1 %v427_v0  ;;  %v79_v3 = vld [vmem:[#allocation5 + $0x28] sm:$0xff]  ;;  %v78_v4 = vld [vmem:[#allocation5 + $0x20] sm:$0xff]  ;;  %vm94_vm1 = vcmask 261120   ;;  %v428_v14 = vmov -inf  }
  0x26   :  { %122 = vmatprep.subr.mxu0 %v81_v1  ;;  %v77_v5 = vld [vmem:[#allocation5 + $0x18] sm:$0xff]  ;;  %v76_v6 = vld [vmem:[#allocation5 + $0x10] sm:$0xff]  ;;  %v75_v7 = vld [vmem:[#allocation5 + $0x8] sm:$0xff]  ;;  %70 = vst.msk [vmem:[#allocation2] sm:$0xff] %vm69_vm0, %v428_v14  ;;  %vm186_vm2 = vcmask 523264   ;;  %v85_v29 = vshrl.u32 %v84_v28, 7 }
  0x27   :  { %123 = vmatpush1.msra.mxu0 %v80_v2  ;;  %v74_v8 = vld [vmem:[#allocation5] sm:$0xff]  ;;  %v73_v9 = vld [vmem:[%s501_s0] sm:$0xff]  ;;  %v184_v11 = vld [vmem:[#allocation9 + $0x70] sm:$0xff]  ;;  %v429_v40 = vmov 0  }
  0x28   :  { %124 = vmatprep.subr.mxu0 %v79_v3  ;;  %v185_v10 = vld [vmem:[#allocation9 + $0x78] sm:$0xff]  ;;  %v183_v12 = vld [vmem:[#allocation9 + $0x68] sm:$0xff]  ;;  %v182_v13 = vld [vmem:[#allocation9 + $0x60] sm:$0xff]  ;;  %v86_v30 = vsub.s32 0, %v85_v29  ;;  %v90_v31 = vsub.s32 1, %v85_v29  ;;  %348 = vset.pattern.permute.xlu0 %v429_v40 }
  0x29   :  { %125 = vmatpush1.msra.mxu0 %v78_v4  ;;  %206 = vmatprep.subr.mxu1 %v185_v10  ;;  %v181_v15 = vld [vmem:[#allocation9 + $0x58] sm:$0xff]  ;;  %v180_v16 = vld [vmem:[#allocation9 + $0x50] sm:$0xff]  ;;  %v179_v17 = vld [vmem:[#allocation9 + $0x48] sm:$0xff] }
  0x2a   :  { %126 = vmatprep.subr.mxu0 %v77_v5  ;;  %207 = vmatpush1.msra.mxu1 %v184_v11  ;;  %v178_v18 = vld [vmem:[#allocation9 + $0x40] sm:$0xff]  ;;  %v177_v19 = vld [vmem:[#allocation9 + $0x38] sm:$0xff]  ;;  %v176_v20 = vld [vmem:[#allocation9 + $0x30] sm:$0xff] }
  0x2b   :  { %127 = vmatpush1.msra.mxu0 %v76_v6  ;;  %208 = vmatprep.subr.mxu1 %v183_v12  ;;  %v175_v21 = vld [vmem:[#allocation9 + $0x28] sm:$0xff]  ;;  %v174_v22 = vld [vmem:[#allocation9 + $0x20] sm:$0xff]  ;;  %v173_v23 = vld [vmem:[#allocation9 + $0x18] sm:$0xff] }
  0x2c   :  { %128 = vmatprep.subr.mxu0 %v75_v7  ;;  %209 = vmatpush1.msra.mxu1 %v182_v13  ;;  %v172_v24 = vld [vmem:[#allocation9 + $0x10] sm:$0xff]  ;;  %v171_v25 = vld [vmem:[#allocation9 + $0x8] sm:$0xff]  ;;  %v170_v26 = vld [vmem:[#allocation9] sm:$0xff] }
  0x2d   :  { %129 = vmatpush1.msra.mxu0 %v74_v8  ;;  %210 = vmatprep.subr.mxu1 %v181_v15  ;;  %v169_v27 = vld [vmem:[#allocation7] sm:$0xff]  ;;  %v82_v32 = vld [vmem:[%s503_s2] sm:$0x3]  ;;  %v314_v12 = vld [vmem:[#allocation4] sm:$0xff] }
  0x2e   :  { %338 = vmatmul.mubr.msk.f32.vlgmr.msra.gmra.mxu0 %vm94_vm1, %v73_v9  ;;  %211 = vmatpush1.msra.mxu1 %v180_v16  ;;  %v87_v33 = vrot.slane %v82_v32, %v86_v30  ;;  %v91_v34 = vrot.slane %v82_v32, %v90_v31  ;;  %v261_v41 = vld [vmem:[%s507_s6] sm:$0xff]  ;;  %v306_v9 = vld [vmem:[#allocation3] sm:$0xff] }
  0x2f   :  { %212 = vmatprep.subr.mxu1 %v179_v17  ;;  %349 = vset.pattern.permute.xlu1 %v429_v40  ;;  %v287_v42 = vld [vmem:[#allocation2] sm:$0xff] }
  0x30   :  { %213 = vmatpush1.msra.mxu1 %v178_v18  ;;  %265 = vperm.xlu1 %349, %v261_v41   ;;  %v262_v50 = vld [vmem:[%s506_s5] sm:$0x3] }
  0x31   :  { %214 = vmatprep.subr.mxu1 %v177_v19  ;;  %v272_v53 = vrot.slane %v262_v50, %v86_v30  ;;  %v276_v54 = vrot.slane %v262_v50, %v90_v31 }
  0x32   :  { %215 = vmatpush1.msra.mxu1 %v176_v20 }
  0x33   :  { %216 = vmatprep.subr.mxu1 %v175_v21 }
  0x34   :  { %217 = vmatpush1.msra.mxu1 %v174_v22 }
  0x35   :  { %218 = vmatprep.subr.mxu1 %v173_v23 }
  0x36   :  { %219 = vmatpush1.msra.mxu1 %v172_v24 }
  0x37   :  { %220 = vmatprep.subr.mxu1 %v171_v25 }
  0x38   :  { %221 = vmatpush1.msra.mxu1 %v170_v26 }
  0x39   :  { %339 = vmatmul.mubr.msk.f32.vlgmr.msra.gmra.mxu1 %vm186_vm2, %v169_v27 }
  0xab   :  { %v266_v55 = vpop.permute.xlu1 %265 }
  0xac   :  { %v279_v58 = vadd.f32 %v272_v53, %v266_v55  ;;  %v280_v59 = vadd.f32 %v276_v54, %v266_v55 }
  0xee   :  { %v164_v35 = vpop.f32.mrf.mxu0 }
  0xef   :  { %v165_v37 = vadd.f32 %v164_v35, %v87_v33 }
  0xf0   :  { %v166_v36 = vpop.f32.mrf.mxu0 }
  0xf1   :  { %v167_v38 = vadd.f32 %v166_v36, %v91_v34 }
  0xf3   :  { %v288_v39 = vmax.f32 %v165_v37, %v167_v38 }
  0xf5   :  { %289 = vmax.xlane.f32.xlu0 %v288_v39 }
  0xf9   :  { %v256_v49 = vpop.f32.mrf.mxu1 }
  0xfa   :  { %v281_v57 = vmul.f32 -0.03125, %v256_v49 }
  0xfb   :  { %v258_v56 = vpop.f32.mrf.mxu1 }
  0xfc   :  { %v282_v60 = vmul.f32 -0.03125, %v258_v56  ;;  %v283_v61 = vadd.f32 %v281_v57, %v279_v58 }
  0xfe   :  { %v284_v62 = vadd.f32 %v282_v60, %v280_v59  ;;  %v285_v63 = vmax.f32 %v283_v61, 0.0 }
 0x100   :  { %v286_v0 = vmax.f32 %v284_v62, 0.0 }
 0x17e   :  { %v290_v43 = vpop.xlane.xlu0 %289 }
 0x17f   :  { %v291_v44 = vmax.f32 %v287_v42, %v290_v43 }
 0x181   :  { %v292_v45 = vsub.f32 %v287_v42, %v291_v44  ;;  %323 = vst.msk [vmem:[#allocation2] sm:$0xff] %vm69_vm0, %v291_v44  ;;  %297 = vperm.xlu0 %348, %v291_v44  }
 0x183   :  { %v293_v7 = vmul.f32 1.442695, %v292_v45 }
 0x1fc   :  { %v298_v46 = vpop.permute.xlu0 %297 }
 0x1fd   :  { %v300_v47 = vsub.f32 %v165_v37, %v298_v46  ;;  %v301_v48 = vsub.f32 %v167_v38, %v298_v46 }
 0x1ff   :  { %v302_v51 = vmul.f32 1.442695, %v300_v47  ;;  %v304_v52 = vmul.f32 1.442695, %v301_v48 }
 0x201   :  { %350 = vpow2.f32 %v302_v51 }
 0x202   :  { %352 = vpow2.f32 %v304_v52 }
 0x203   :  { %354 = vpow2.f32 %v293_v7 }
 0x20e   :  { %v351_v1 = vpop.eup %350 }
 0x20f   :  { %v353_v2 = vpop.eup %352  ;;  %v316_v4 = vmul.f32 %v351_v1, %v285_v63 }
 0x210   :  { %v308_v3 = vadd.f32 %v353_v2, %v351_v1  ;;  %v317_v5 = vmul.f32 %v353_v2, %v286_v0  ;;  %v355_v8 = vpop.eup %354 }
 0x211   :  { %v307_v10 = vmul.f32 %v355_v8, %v306_v9  ;;  %v315_v14 = vmul.f32 %v355_v8, %v314_v12 }
 0x212   :  { %309 = vadd.xlane.f32.xlu1 %v308_v3  ;;  %v318_v6 = vadd.f32 %v317_v5, %v316_v4 }
 0x216   :  { %319 = vadd.xlane.f32.xlu1 %v318_v6 }
 0x29b   :  { %v310_v11 = vpop.xlane.xlu1 %309 }
 0x29c   :  { %v311_v13 = vadd.f32 %v310_v11, %v307_v10 }
 0x29e   :  { %313 = vst.msk [vmem:[#allocation3] sm:$0xff] %vm69_vm0, %v311_v13 }
 0x29f   :  { %v320_v15 = vpop.xlane.xlu1 %319 }
 0x2a0   :  { %v321_v16 = vadd.f32 %v320_v15, %v315_v14 }
 0x2a2   :  { %322 = vst.msk [vmem:[#allocation4] sm:$0xff] %vm69_vm0, %v321_v16 }
 0x2a5   :  { %v328_v17 = vld [vmem:[#allocation3] sm:$0xff] }
 0x2a6   :  { %356 = vrcp.f32 %v328_v17 }
 0x2a9   :  { %v327_v19 = vld [vmem:[#allocation4] sm:$0xff] }
 0x2b3   :  { %v357_v18 = vpop.eup %356 }
 0x2b4   :  { %v330_v20 = vmul.f32 %v357_v18, %v327_v19 }
 0x2b6   :  { %331 = vst.msk [vmem:[%s508_s7] sm:$0xff] %vm69_vm0, %v330_v20 }
 0x2b7   :  { %336 = vsyncpa [#allocation6], 1 }
 0x2b8   :  { %337 = vsyncpa [#allocation8], 1 }

</bundles_post_ra>
